<compile_context>
chip_gen: v5e
topology: v5e:2x2
jax: 0.10.0
libtpu: 0.0.40
codegen_flags: <defaults>
</compile_context>

<pallas_src>
import jax
import jax.numpy as jnp
from jax.experimental import pallas as pl
from jax.experimental.pallas import tpu as pltpu

LANE = 128
SUBLANE = 8
SMALL_INPUT_BYTES = 2 * 1024 * 1024   # below this, fused XLA beats a pallas_call


def _cdiv(a, b):
    return -(-a // b)


def _device_kind():
    try:
        return jax.devices()[0].device_kind.lower()
    except Exception:
        return ""


def _num_tensorcores():
    # Only v7x exposes 2 TensorCores per chip to a 'parallel' grid axis.
    return 2 if "v7" in _device_kind() else 1


def _target_block_bytes():
    # Per-input DMA block size: large enough to hide ~0.35us per-grid-step overhead
    # against each generation's HBM bandwidth (v7x has the highest per-TC BW).
    return (4 if "v7" in _device_kind() else 2) * 1024 * 1024


def _jnp_rmse(output, targets, n):
    d = output.reshape(-1).astype(jnp.float32) - targets.reshape(-1).astype(jnp.float32)
    return jnp.sqrt(jnp.sum(d * d) / n)


def rmse_loss(output, targets, *, force_kernel=False):
    """torch.sqrt(torch.nn.MSELoss()(output, targets)) — mean over ALL elements."""
    assert output.shape == targets.shape, "output/targets must match (MSELoss default)"
    n = int(output.size)            # trace-time static; new shapes recompile
    assert n > 0

    itemsize = max(jnp.dtype(output.dtype).itemsize, jnp.dtype(targets.dtype).itemsize)
    total_bytes = n * (jnp.dtype(output.dtype).itemsize + jnp.dtype(targets.dtype).itemsize)

    rows = n // LANE                # 128-aligned prefix only; no padding copy
    n_aligned = rows * LANE

    # Pure-XLA fallback: tiny inputs where launch/pipeline overhead dominates,
    # or fewer than one sublane-group of aligned rows.
    if rows < SUBLANE or (total_bytes < SMALL_INPUT_BYTES and not force_kernel):
        return _jnp_rmse(output, targets, n)

    o_flat = output.reshape(-1)
    t_flat = targets.reshape(-1)

    # Lane-dense (rows, 128) view of the aligned prefix. When n is already
    # 128-aligned this is a pure reshape (bitcast) — zero extra HBM traffic.
    o2 = o_flat[:n_aligned].reshape(rows, LANE)
    t2 = t_flat[:n_aligned].reshape(rows, LANE)

    # Block size chosen by BYTES so bf16/fp16 inputs keep ~2-4 MiB DMA blocks.
    target_rows = max(SUBLANE, _target_block_bytes() // (LANE * itemsize))
    target_rows = (target_rows // SUBLANE) * SUBLANE
    block_rows = min(target_rows, (rows // SUBLANE) * SUBLANE)   # multiple of 8, <= rows

    total_tiles = _cdiv(rows, block_rows)
    num_cores = min(_num_tensorcores(), total_tiles)
    tiles_per_core = _cdiv(total_tiles, num_cores)

    def kernel(o_ref, t_ref, out_ref, acc_ref):
        c = pl.program_id(0)
        j = pl.program_id(1)

        @pl.when(j == 0)
        def _():
            acc_ref[...] = jnp.zeros_like(acc_ref)

        # Per-tile f32 cast: HBM traffic stays at the input dtype width.
        d = o_ref[...].astype(jnp.float32) - t_ref[...].astype(jnp.float32)
        dsq = d * d

        tile = c * tiles_per_core + j
        remaining = rows - tile * block_rows

        # Fast path: full interior tile — pure vreg adds, no mask work.
        @pl.when(remaining >= block_rows)
        def _():
            acc_ref[...] += dsq.reshape(block_rows // SUBLANE, SUBLANE, LANE).sum(axis=0)

        # Slow path: trailing partial tile, or clamped duplicate tile (remaining<=0).
        # Pallas leaves out-of-range rows of a partial block undefined, so the mask
        # is load-bearing here.
        @pl.when(remaining < block_rows)
        def _():
            row_ids = jax.lax.broadcasted_iota(jnp.int32, (block_rows, LANE), 0)
            masked = jnp.where(row_ids < remaining, dsq, jnp.float32(0.0))
            acc_ref[...] += masked.reshape(block_rows // SUBLANE, SUBLANE, LANE).sum(axis=0)

        # One cross-lane/sublane reduce per core, on a single vreg.
        @pl.when(j == tiles_per_core - 1)
        def _():
            out_ref[0, 0] = jnp.sum(acc_ref[...])

    def in_index(c, j):
        tile = jnp.minimum(c * tiles_per_core + j, total_tiles - 1)
        return (tile, 0)

    partials = pl.pallas_call(
        kernel,
        out_shape=jax.ShapeDtypeStruct((num_cores, 1), jnp.float32),
        grid=(num_cores, tiles_per_core),
        in_specs=[
            pl.BlockSpec((block_rows, LANE), in_index),
            pl.BlockSpec((block_rows, LANE), in_index),
        ],
        out_specs=pl.BlockSpec((1, 1), lambda c, j: (c, 0), memory_space=pltpu.SMEM),
        scratch_shapes=[pltpu.VMEM((SUBLANE, LANE), jnp.float32)],
        compiler_params=pltpu.CompilerParams(
            dimension_semantics=("parallel", "arbitrary"),
            vmem_limit_bytes=32 * 1024 * 1024,
        ),
    )(o2, t2)

    sse = jnp.sum(partials)

    # <=127-element unaligned tail handled with plain jnp (no bulk pad copy).
    if n_aligned != n:
        d_tail = o_flat[n_aligned:].astype(jnp.float32) - t_flat[n_aligned:].astype(jnp.float32)
        sse = sse + jnp.sum(d_tail * d_tail)

    # Mean over the TRUE element count, then sqrt — matches torch.sqrt(MSELoss(...)).
    return jnp.sqrt(sse / n)


if __name__ == "__main__":
    key = jax.random.PRNGKey(0)
    k1, k2 = jax.random.split(key)

    # Small shape consistent with a generic regression output (2048 elements,
    # 128-aligned). force_kernel=True so the Pallas path (not the tiny-input
    # XLA fallback) is exercised.
    shape = (2, 4, 16, 16)
    output = jax.random.normal(k1, shape, dtype=jnp.float32)
    targets = jax.random.normal(k2, shape, dtype=jnp.float32)

    rmse = rmse_loss(output, targets, force_kernel=True)
    jax.block_until_ready(rmse)
    ref = jnp.sqrt(jnp.mean((output - targets) ** 2))
    assert jnp.allclose(rmse, ref, rtol=1e-5, atol=1e-6), (rmse, ref)

    # Unaligned size: exercises the masked partial tile + wrapper-side jnp tail.
    shape2 = (3, 5, 77)   # 1155 elements -> 9 aligned rows + 3-element tail
    o2 = jax.random.normal(k1, shape2, dtype=jnp.float32)
    t2 = jax.random.normal(k2, shape2, dtype=jnp.float32)
    rmse2 = rmse_loss(o2, t2, force_kernel=True)
    jax.block_until_ready(rmse2)
    ref2 = jnp.sqrt(jnp.mean((o2 - t2) ** 2))
    assert jnp.allclose(rmse2, ref2, rtol=1e-5, atol=1e-6), (rmse2, ref2)

    print("KERNEL_OK")
</pallas_src>

<mosaic_0001>
module attributes {stable_mosaic.version = 11 : i64} {
  func.func @kernel(%arg0: i32, %arg1: i32, %arg2: memref<16x128xf32, #tpu.memory_space<vmem>>, %arg3: memref<16x128xf32, #tpu.memory_space<vmem>>, %arg4: memref<1x1xf32, #tpu.memory_space<smem>>, %arg5: memref<8x128xf32, #tpu.memory_space<vmem>>) attributes {dimension_semantics = [#tpu.dimension_semantics<parallel>, #tpu.dimension_semantics<arbitrary>], iteration_bounds = array<i64: 1, 1>, scalar_prefetch = 0 : i64, scratch_operands = 1 : i64, tpu.core_type = #tpu.core_type<tc>, window_params = [{transform_indices = @transform_0, window_bounds = array<i64: 16, 128>}, {transform_indices = @transform_1, window_bounds = array<i64: 16, 128>}, {transform_indices = @transform_2, window_bounds = array<i64: 1, 1>}]} {
    %c0_i32 = arith.constant 0 : i32
    %0 = arith.cmpi eq, %arg1, %c0_i32 : i32
    %1 = arith.extui %0 : i1 to i32
    %c0_i32_0 = arith.constant 0 : i32
    %2 = arith.cmpi ne, %1, %c0_i32_0 : i32
    scf.if %2 {
      %cst = arith.constant 0.000000e+00 : f32
      %20 = vector.broadcast %cst : f32 to vector<8x128xf32>
      %c0_11 = arith.constant 0 : index
      %c0_12 = arith.constant 0 : index
      %21 = vector.load %arg5[%c0_11, %c0_12] : memref<8x128xf32, #tpu.memory_space<vmem>>, vector<8x128xf32>
      tpu.vector_store %arg5[%c0_11, %c0_12], %20 {strides = array<i32>} : memref<8x128xf32, #tpu.memory_space<vmem>>, vector<8x128xf32>,
    } else {
    }
    %c0 = arith.constant 0 : index
    %c0_1 = arith.constant 0 : index
    %3 = vector.load %arg2[%c0, %c0_1] : memref<16x128xf32, #tpu.memory_space<vmem>>, vector<16x128xf32>
    %c0_2 = arith.constant 0 : index
    %c0_3 = arith.constant 0 : index
    %4 = vector.load %arg3[%c0_2, %c0_3] : memref<16x128xf32, #tpu.memory_space<vmem>>, vector<16x128xf32>
    %5 = arith.subf %3, %4 : vector<16x128xf32>
    %6 = arith.mulf %5, %5 : vector<16x128xf32>
    %c1_i32 = arith.constant 1 : i32
    %7 = arith.muli %arg0, %c1_i32 : i32
    %8 = arith.addi %7, %arg1 : i32
    %c16_i32 = arith.constant 16 : i32
    %9 = arith.muli %8, %c16_i32 : i32
    %c16_i32_4 = arith.constant 16 : i32
    %10 = arith.subi %c16_i32_4, %9 : i32
    %c16_i32_5 = arith.constant 16 : i32
    %11 = arith.cmpi sge, %10, %c16_i32_5 : i32
    %12 = arith.extui %11 : i1 to i32
    %c0_i32_6 = arith.constant 0 : i32
    %13 = arith.cmpi ne, %12, %c0_i32_6 : i32
    scf.if %13 {
      %c0_11 = arith.constant 0 : index
      %c0_12 = arith.constant 0 : index
      %20 = vector.load %arg5[%c0_11, %c0_12] : memref<8x128xf32, #tpu.memory_space<vmem>>, vector<8x128xf32>
      %21 = vector.shape_cast %6 : vector<16x128xf32> to vector<2x8x128xf32>
      %cst = arith.constant dense<0.000000e+00> : vector<8x128xf32>
      %22 = vector.multi_reduction <add>, %21, %cst [0] : vector<2x8x128xf32> to vector<8x128xf32>
      %23 = arith.addf %20, %22 : vector<8x128xf32>
      %c0_13 = arith.constant 0 : index
      %c0_14 = arith.constant 0 : index
      %24 = vector.load %arg5[%c0_13, %c0_14] : memref<8x128xf32, #tpu.memory_space<vmem>>, vector<8x128xf32>
      tpu.vector_store %arg5[%c0_13, %c0_14], %23 {strides = array<i32>} : memref<8x128xf32, #tpu.memory_space<vmem>>, vector<8x128xf32>,
    } else {
    }
    %c16_i32_7 = arith.constant 16 : i32
    %14 = arith.cmpi slt, %10, %c16_i32_7 : i32
    %15 = arith.extui %14 : i1 to i32
    %c0_i32_8 = arith.constant 0 : i32
    %16 = arith.cmpi ne, %15, %c0_i32_8 : i32
    scf.if %16 {
      %20 = tpu.iota {dimensions = array<i32: 0>} : vector<16x128xi32>
      %21 = vector.broadcast %10 : i32 to vector<16x128xi32>
      %22 = arith.cmpi slt, %20, %21 : vector<16x128xi32>
      %cst = arith.constant 0.000000e+00 : f32
      %23 = vector.broadcast %cst : f32 to vector<16x128xf32>
      %24 = arith.select %22, %6, %23 : vector<16x128xi1>, vector<16x128xf32>
      %c0_11 = arith.constant 0 : index
      %c0_12 = arith.constant 0 : index
      %25 = vector.load %arg5[%c0_11, %c0_12] : memref<8x128xf32, #tpu.memory_space<vmem>>, vector<8x128xf32>
      %26 = vector.shape_cast %24 : vector<16x128xf32> to vector<2x8x128xf32>
      %cst_13 = arith.constant dense<0.000000e+00> : vector<8x128xf32>
      %27 = vector.multi_reduction <add>, %26, %cst_13 [0] : vector<2x8x128xf32> to vector<8x128xf32>
      %28 = arith.addf %25, %27 : vector<8x128xf32>
      %c0_14 = arith.constant 0 : index
      %c0_15 = arith.constant 0 : index
      %29 = vector.load %arg5[%c0_14, %c0_15] : memref<8x128xf32, #tpu.memory_space<vmem>>, vector<8x128xf32>
      tpu.vector_store %arg5[%c0_14, %c0_15], %28 {strides = array<i32>} : memref<8x128xf32, #tpu.memory_space<vmem>>, vector<8x128xf32>,
    } else {
    }
    %c0_i32_9 = arith.constant 0 : i32
    %17 = arith.cmpi eq, %arg1, %c0_i32_9 : i32
    %18 = arith.extui %17 : i1 to i32
    %c0_i32_10 = arith.constant 0 : i32
    %19 = arith.cmpi ne, %18, %c0_i32_10 : i32
    scf.if %19 {
      %c0_11 = arith.constant 0 : index
      %c0_12 = arith.constant 0 : index
      %20 = vector.load %arg5[%c0_11, %c0_12] : memref<8x128xf32, #tpu.memory_space<vmem>>, vector<8x128xf32>
      %21 = vector.shape_cast %20 : vector<8x128xf32> to vector<1x8x128xf32>
      %cst = arith.constant dense<0.000000e+00> : vector<1xf32>
      %22 = vector.multi_reduction <add>, %21, %cst [1, 2] : vector<1x8x128xf32> to vector<1xf32>
      %23 = vector.shape_cast %22 : vector<1xf32> to vector<1x1x1xf32>
      %24 = vector.extract %23[0, 0, 0] : f32 from vector<1x1x1xf32>
      %c0_13 = arith.constant 0 : index
      %c0_14 = arith.constant 0 : index
      %25 = memref.load %arg4[%c0_13, %c0_14] : memref<1x1xf32, #tpu.memory_space<smem>>
      memref.store %24, %arg4[%c0_13, %c0_14] : memref<1x1xf32, #tpu.memory_space<smem>>
    } else {
    }
    return
  }
  func.func @transform_0(%arg0: i32, %arg1: i32) -> (i32, i32) {
    %c1_i32 = arith.constant 1 : i32
    %0 = arith.muli %arg0, %c1_i32 : i32
    %1 = arith.addi %0, %arg1 : i32
    %c0_i32 = arith.constant 0 : i32
    %2 = arith.minsi %1, %c0_i32 : i32
    %c0_i32_0 = arith.constant 0 : i32
    %c0_i32_1 = arith.constant 0 : i32
    return %2, %c0_i32_0 : i32, i32
  }
  func.func @transform_1(%arg0: i32, %arg1: i32) -> (i32, i32) {
    %c1_i32 = arith.constant 1 : i32
    %0 = arith.muli %arg0, %c1_i32 : i32
    %1 = arith.addi %0, %arg1 : i32
    %c0_i32 = arith.constant 0 : i32
    %2 = arith.minsi %1, %c0_i32 : i32
    %c0_i32_0 = arith.constant 0 : i32
    %c0_i32_1 = arith.constant 0 : i32
    return %2, %c0_i32_0 : i32, i32
  }
  func.func @transform_2(%arg0: i32, %arg1: i32) -> (i32, i32) {
    %c0_i32 = arith.constant 0 : i32
    %c0_i32_0 = arith.constant 0 : i32
    return %arg0, %c0_i32 : i32, i32
  }
}

</mosaic_0001>

<bundles_post_ra>
// kernel: tpu_custom_call.1
= control target key start
LH: loop header
LB: loop body
LE: loop exit
PB: predicated region body
PF: predicated region fallthrough
CT: control target
= control target key end

     0   :  { %7 = vsyncpa [#allocation4], 0  ;;  %s242_s0 = inlined_call_operand.hbm [shape: f32[16,128], index: 0, kind: input, shape index: {}]   ;;  %s243_s1 = inlined_call_operand.hbm [shape: f32[16,128], index: 1, kind: input, shape index: {}]   ;;  %s244_s2 = inlined_call_operand.hbm [shape: f32[1,1], index: 2, kind: output, shape index: {}]  }
   0x1   :  { %8 = vsyncpa [#allocation7], 0 }
   0x2   :  { %9 = vsyncpa [#allocation5], 0  ;;  %s20_s11 = sshll.u32 %s242_s0, 4  ;;  %s213_s12 = smov [#allocation3]   ;;  %s21_s11 = int_to_ptr.hbm [resolvable:$true] %s20_s11 }
   0x3   :  { %s22_s13 = sshll.u32 %s213_s12, 4  ;;  %s39_s16 = sshll.u32 %s243_s1, 4  ;;  %s23_s13 = int_to_ptr.vmem [resolvable:$true] %s22_s13  ;;  %s40_s16 = int_to_ptr.hbm [resolvable:$true] %s39_s16 }
   0x4   :  { %s214_s17 = smov 128   ;;  %s215_s18 = smov 8  }
   0x5   :  { %28 = dma.hbm_to_vmem [thread:$0]  %s21_s11, 256, %s23_s13, [#allocation4], %s214_s17, %s214_s17, %s215_s18  }
   0x6   :  { %s216_s19 = smov [#allocation6]  }
   0x7   :  { %s41_s20 = sshll.u32 %s216_s19, 4  ;;  %s42_s20 = int_to_ptr.vmem [resolvable:$true] %s41_s20 }
   0x8   :  { %47 = dma.hbm_to_vmem [thread:$0]  %s40_s16, 256, %s42_s20, [#allocation7], %s214_s17, %s214_s17, %s215_s18  }
   0x9   :  { %207 = dma.done.wait [#allocation4], 256  }
   0xa   :  { %208 = vsyncadd [#allocation4], 4294967040 }
   0xb   :  { %209 = dma.done.wait [#allocation7], 256  }
   0xc   :  { %210 = vsyncadd [#allocation7], 4294967040  ;;  %v69_v0 = vld [vmem:[#allocation3] sm:$0xff]  ;;  %v70_v1 = vld [vmem:[#allocation3 + $0x8] sm:$0xff]  ;;  %s124_s21 = sshll.u32 %s244_s2, 4  ;;  %s217_s23 = smov [#allocation8]   ;;  %s125_s21 = int_to_ptr.hbm [resolvable:$true] %s124_s21 }
   0xd   :  { %v71_v2 = vld [vmem:[#allocation6] sm:$0xff]  ;;  %v72_v3 = vld [vmem:[#allocation6 + $0x8] sm:$0xff] }
   0xe   :  { %v73_v4 = vsub.f32 %v69_v0, %v71_v2  ;;  %v74_v5 = vsub.f32 %v70_v1, %v72_v3 }
  0x10   :  { %v75_v6 = vmul.f32 %v73_v4, %v73_v4  ;;  %v76_v7 = vmul.f32 %v74_v5, %v74_v5 }
  0x12   :  { %v85_v8 = vadd.f32 %v76_v7, %v75_v6 }
  0x14   :  { %108 = vadd.xlane.f32.xlu0 %v85_v8 }
  0x87   :  { %v109_v9 = vpop.xlane.xlu0 %108 }
  0x88   :  { %v110_v10 = vrot.slane %v109_v9, 4 }
  0x8a   :  { %v111_v11 = vadd.f32 %v110_v10, %v109_v9 }
  0x8c   :  { %v112_v12 = vrot.slane %v111_v11, 2 }
  0x8e   :  { %v113_v13 = vadd.f32 %v112_v12, %v111_v11 }
  0x90   :  { %v114_v14 = vrot.slane %v113_v13, 1 }
  0x92   :  { %v115_v15 = vadd.f32 %v114_v14, %v113_v13 }
  0x94   :  { %140 = vpush %v115_v15 }
  0xc5   :  { %s141_s22 = spop %140 }
  0xc6   :  { %118 = sst [smem:[#allocation8]] %s141_s22 }
  0xc7   :  { %127 = dma.smem_to_hbm %s217_s23, 16, %s125_s21, [#allocation5]  }
  0xc8   :  { %211 = dma.done.wait [#allocation5], 16  }
  0xc9   :  { %212 = vsyncadd [#allocation5], 4294967280 }
  0xca   :  { %132 = sfence }
  0xcb   :  { %133 = vsyncpa [#allocation4], 1 }
  0xcc   :  { %134 = vsyncpa [#allocation7], 1 }
  0xcd   :  { %135 = vsyncpa [#allocation5], 1 }

</bundles_post_ra>
